<compile_context>
chip_gen: v6e
topology: v6e:2x2x1
jax: 0.10.0
libtpu: 0.0.40
codegen_flags: <defaults>
</compile_context>

<pallas_src>
import jax
import jax.numpy as jnp
from jax.experimental import pallas as pl
from jax.experimental.pallas import tpu as pltpu


# --------------------------------------------------------------------------- kernels
def _inter_fused_kernel(x_ref, w_ref, b_ref, o_ref):
    """Fully fused forward: one GEMM + bias + LeakyReLU(0.1).

    x_ref : (TB, in_ch)   batch tile
    w_ref : (in_ch, N)    dense1 . dense2 . pad . conv . pixelshuffle, pre-composed
    b_ref : (1, N)        composed bias (f32)
    o_ref : (TB, N)       N = ae_out_ch * (2L)^2, lane-dense (multiple of 128 here)
    """
    y = jnp.dot(x_ref[...], w_ref[...], preferred_element_type=jnp.float32)
    y = y + b_ref[...]
    o_ref[...] = jnp.where(y > 0, y, 0.1 * y).astype(o_ref.dtype)


def _inter_2stage_kernel(x_ref, w1_ref, b1_ref, wf_ref, bf_ref, o_ref):
    """Two-GEMM forward (dense1 kept separate when folding it is not cheaper)."""
    h = jnp.dot(x_ref[...], w1_ref[...], preferred_element_type=jnp.float32)
    h = h + b1_ref[...]
    y = jnp.dot(h.astype(wf_ref.dtype), wf_ref[...],
                preferred_element_type=jnp.float32)
    y = y + bf_ref[...]
    o_ref[...] = jnp.where(y > 0, y, 0.1 * y).astype(o_ref.dtype)


# --------------------------------------------------------------------------- wrapper
def inter_forward(x, w1, b1, w2, b2, wc, bc, *, ae_out_ch, lowest_dense_res=4,
                  kernel_size=3, tb=None, compute_dtype=jnp.float32):
    """Forward of `Inter` with PyTorch-layout parameters.

    x  : (B, in_ch)
    w1 : (ae_ch, in_ch)                 b1 : (ae_ch,)
    w2 : (L*L*ae_out_ch, ae_ch)         b2 : (L*L*ae_out_ch,)
    wc : (4*ae_out_ch, ae_out_ch, K, K) bc : (4*ae_out_ch,)     (conv1 of Upscale)
    returns (B, ae_out_ch, 2L, 2L) NCHW, matching the PyTorch module.

    compute_dtype : dtype of the GEMM *operands* (accumulation is always f32).
                    Use jnp.bfloat16 on v6e/v7x for the bf16-native MXU rate.
    tb            : batch rows per grid step (default min(B, 256); multiple of 8
                    or == B).  Keep tb <= B/2 on v7x so both TensorCores get work.
    """
    f32 = jnp.float32
    B, in_ch = x.shape
    ae_ch = w1.shape[0]
    L, K, C = lowest_dense_res, kernel_size, ae_out_ch
    Cout4 = wc.shape[0]
    Cout = Cout4 // 4
    N = Cout * (2 * L) * (2 * L)                        # == Cout4 * L * L
    assert Cout4 == 4 * C and wc.shape == (Cout4, C, K, K)
    assert w2.shape == (L * L * C, ae_ch) and w1.shape == (ae_ch, in_ch)

    # ---- one-time weight preprocessing: compose the affine chain in f32 ----------
    # dense2 -> reshape(NCHW) -> SAME pad -> conv3x3 -> PixelShuffle(2)/NCHW-flat
    # is affine in the dense1 output h; push basis vectors (and the zero vector)
    # through it to get a single (ae_ch, N) weight and (1, N) bias.  LeakyReLU
    # commutes with the PixelShuffle permutation, so it stays in the kernel.
    pad_beg = (K - 1) // 2
    pad_end = (K - 1) - pad_beg

    def chain(h, b2_, bc_):
        z = h @ w2.astype(f32).T + b2_                                   # (M, L*L*C)
        fmap = z.reshape(-1, C, L, L)
        conv = jax.lax.conv_general_dilated(
            fmap, wc.astype(f32), window_strides=(1, 1),
            padding=((pad_beg, pad_end), (pad_beg, pad_end)),
            dimension_numbers=("NCHW", "OIHW", "NCHW"),
        ) + bc_[None, :, None, None]                                     # (M, 4C, L, L)
        y = conv.reshape(-1, Cout, 2, 2, L, L)                           # (m,c,i,j,h,w)
        y = jnp.transpose(y, (0, 1, 4, 2, 5, 3))                         # (m,c,h,i,w,j)
        return y.reshape(-1, N)                                          # shuffled NCHW-flat

    eye = jnp.eye(ae_ch, dtype=f32)
    w_fused = chain(eye, jnp.zeros_like(b2, f32), jnp.zeros_like(bc, f32))      # (ae_ch, N)
    b_fused = chain(jnp.zeros((1, ae_ch), f32), b2.astype(f32), bc.astype(f32))  # (1, N)

    if tb is None:
        tb = B if B <= 256 else 256
    grid = (pl.cdiv(B, tb),)
    out_shape = jax.ShapeDtypeStruct((B, N), f32)
    cparams = pltpu.CompilerParams(
        dimension_semantics=("parallel",),     # batch tiles are independent (megacore/2 TC)
        vmem_limit_bytes=32 * 1024 * 1024,     # usage here is a few MiB; fits v5e/v6e/v7x
    )

    # Fold dense1 in when it reduces per-row MACs (in_ch*N vs in_ch*ae_ch + ae_ch*N);
    # at the reference shapes (in_ch == ae_ch) it does -> single-GEMM kernel.
    fold_dense1 = in_ch * N <= in_ch * ae_ch + ae_ch * N

    if fold_dense1:
        w_all = w1.astype(f32).T @ w_fused                               # (in_ch, N)
        b_all = b1.astype(f32)[None, :] @ w_fused + b_fused              # (1, N)
        conv_flat = pl.pallas_call(
            _inter_fused_kernel,
            out_shape=out_shape,
            grid_spec=pltpu.PrefetchScalarGridSpec(
                num_scalar_prefetch=0,
                grid=grid,
                in_specs=[
                    pl.BlockSpec((tb, in_ch), lambda b: (b, 0)),         # batch tile
                    pl.BlockSpec((in_ch, N), lambda b: (0, 0)),          # VMEM-resident weight
                    pl.BlockSpec((1, N), lambda b: (0, 0)),
                ],
                out_specs=pl.BlockSpec((tb, N), lambda b: (b, 0)),       # lane-dense store
            ),
            compiler_params=cparams,
        )(x.astype(compute_dtype), w_all.astype(compute_dtype), b_all)
    else:
        w1t = w1.astype(f32).T
        b1r = b1.astype(f32)[None, :]
        conv_flat = pl.pallas_call(
            _inter_2stage_kernel,
            out_shape=out_shape,
            grid_spec=pltpu.PrefetchScalarGridSpec(
                num_scalar_prefetch=0,
                grid=grid,
                in_specs=[
                    pl.BlockSpec((tb, in_ch), lambda b: (b, 0)),
                    pl.BlockSpec((in_ch, ae_ch), lambda b: (0, 0)),
                    pl.BlockSpec((1, ae_ch), lambda b: (0, 0)),
                    pl.BlockSpec((ae_ch, N), lambda b: (0, 0)),
                    pl.BlockSpec((1, N), lambda b: (0, 0)),
                ],
                out_specs=pl.BlockSpec((tb, N), lambda b: (b, 0)),
            ),
            compiler_params=cparams,
        )(x.astype(compute_dtype), w1t.astype(compute_dtype), b1r,
          w_fused.astype(compute_dtype), b_fused)

    # PixelShuffle(2) + NCHW ordering is already encoded in the weight's column
    # order, so the finishing step is a free reshape (no activation transpose).
    return conv_flat.reshape(B, Cout, 2 * L, 2 * L)


# --------------------------------------------------------------------------- reference
def _reference_forward(x, w1, b1, w2, b2, wc, bc, *,
                       ae_out_ch, lowest_dense_res=4, kernel_size=3):
    """Pure-JAX reference mirroring the PyTorch module."""
    B = x.shape[0]
    L, K, C = lowest_dense_res, kernel_size, ae_out_ch
    h = x @ w1.T + b1
    z = h @ w2.T + b2
    fmap = z.reshape(B, C, L, L)
    pad = (K - 1) // 2
    conv = jax.lax.conv_general_dilated(
        fmap, wc, window_strides=(1, 1),
        padding=((pad, K - 1 - pad), (pad, K - 1 - pad)),
        dimension_numbers=("NCHW", "OIHW", "NCHW"),
    ) + bc[None, :, None, None]
    conv = jnp.where(conv > 0, conv, 0.1 * conv)
    Cout = conv.shape[1] // 4
    y = conv.reshape(B, Cout, 2, 2, L, L)
    y = jnp.transpose(y, (0, 1, 4, 2, 5, 3))
    return y.reshape(B, Cout, 2 * L, 2 * L)


if __name__ == "__main__":
    key = jax.random.PRNGKey(0)
    ks = jax.random.split(key, 8)

    # Small shapes consistent with the module; ae_out_ch=32 -> N = 2048 = 16*128 lanes.
    B, in_ch, ae_ch, ae_out_ch, L, K = 2, 64, 64, 32, 4, 3
    Cout4 = ae_out_ch * 4

    def uinit(k, shape, fan_in):
        bound = 1.0 / (fan_in ** 0.5)
        return jax.random.uniform(k, shape, jnp.float32, -bound, bound)

    x = jax.random.normal(ks[0], (B, in_ch), dtype=jnp.float32)
    w1 = uinit(ks[1], (ae_ch, in_ch), in_ch)
    b1 = uinit(ks[2], (ae_ch,), in_ch)
    w2 = uinit(ks[3], (L * L * ae_out_ch, ae_ch), ae_ch)
    b2 = uinit(ks[4], (L * L * ae_out_ch,), ae_ch)
    wc = uinit(ks[5], (Cout4, ae_out_ch, K, K), ae_out_ch * K * K)
    bc = uinit(ks[6], (Cout4,), ae_out_ch * K * K)

    kwargs = dict(ae_out_ch=ae_out_ch, lowest_dense_res=L, kernel_size=K)

    # ---- f32 operands, tight tolerance -------------------------------------------
    out = inter_forward(x, w1, b1, w2, b2, wc, bc, **kwargs)
    out = jax.block_until_ready(out)
    ref = _reference_forward(x, w1, b1, w2, b2, wc, bc, **kwargs)
    assert out.shape == (B, ae_out_ch, 2 * L, 2 * L), out.shape
    err = float(jnp.max(jnp.abs(out - ref)))
    assert jnp.allclose(out, ref, atol=1e-3, rtol=1e-3), f"f32 mismatch vs reference: {err}"

    # ---- multi-step batch-tiled grid (several TB blocks along "parallel" axis) ----
    xb = jax.random.normal(ks[7], (32, in_ch), dtype=jnp.float32)
    out_b = jax.block_until_ready(
        inter_forward(xb, w1, b1, w2, b2, wc, bc, tb=8, **kwargs))
    ref_b = _reference_forward(xb, w1, b1, w2, b2, wc, bc, **kwargs)
    err_b = float(jnp.max(jnp.abs(out_b - ref_b)))
    assert jnp.allclose(out_b, ref_b, atol=1e-3, rtol=1e-3), f"tiled mismatch: {err_b}"

    # ---- bf16 operands (v6e/v7x MXU rate), f32 accumulation ------------------------
    out_bf = jax.block_until_ready(
        inter_forward(x, w1, b1, w2, b2, wc, bc, compute_dtype=jnp.bfloat16, **kwargs))
    err_bf = float(jnp.max(jnp.abs(out_bf - ref)))
    assert jnp.allclose(out_bf, ref, atol=3e-2, rtol=3e-2), f"bf16 mismatch: {err_bf}"

    print("KERNEL_OK")
</pallas_src>

<mosaic_0001>
module attributes {stable_mosaic.version = 11 : i64} {
  func.func @_inter_fused_kernel(%arg0: i32, %arg1: memref<2x64xf32, #tpu.memory_space<vmem>>, %arg2: memref<64x2048xf32, #tpu.memory_space<vmem>>, %arg3: memref<1x2048xf32, #tpu.memory_space<vmem>>, %arg4: memref<2x2048xf32, #tpu.memory_space<vmem>>) attributes {dimension_semantics = [#tpu.dimension_semantics<parallel>], iteration_bounds = array<i64: 1>, scalar_prefetch = 0 : i64, scratch_operands = 0 : i64, tpu.core_type = #tpu.core_type<tc>, window_params = [{transform_indices = @transform_0, window_bounds = array<i64: 2, 64>}, {pipeline_mode = #tpu.pipeline_mode<synchronous>, transform_indices = @transform_1, window_bounds = array<i64: 64, 2048>}, {pipeline_mode = #tpu.pipeline_mode<synchronous>, transform_indices = @transform_2, window_bounds = array<i64: 1, 2048>}, {transform_indices = @transform_3, window_bounds = array<i64: 2, 2048>}]} {
    %c0 = arith.constant 0 : index
    %c0_0 = arith.constant 0 : index
    %0 = vector.load %arg1[%c0, %c0_0] : memref<2x64xf32, #tpu.memory_space<vmem>>, vector<2x64xf32>
    %c0_1 = arith.constant 0 : index
    %c0_2 = arith.constant 0 : index
    %1 = vector.load %arg2[%c0_1, %c0_2] : memref<64x2048xf32, #tpu.memory_space<vmem>>, vector<64x2048xf32>
    %cst = arith.constant dense<0.000000e+00> : vector<2x2048xf32>
    %2 = tpu.matmul %0, %1, %cst {dimension_numbers = #tpu.dot_dimension_numbers<[1], [0], [0], [1], [0, 0, 1, 1], [], []>} : vector<2x64xf32>, vector<64x2048xf32>, vector<2x2048xf32> -> vector<2x2048xf32>
    %c0_3 = arith.constant 0 : index
    %c0_4 = arith.constant 0 : index
    %3 = vector.load %arg3[%c0_3, %c0_4] : memref<1x2048xf32, #tpu.memory_space<vmem>>, vector<1x2048xf32>
    %4 = vector.broadcast %3 : vector<1x2048xf32> to vector<2x2048xf32>
    %5 = arith.addf %2, %4 : vector<2x2048xf32>
    %cst_5 = arith.constant 0.000000e+00 : f32
    %6 = vector.broadcast %cst_5 : f32 to vector<2x2048xf32>
    %7 = arith.cmpf ogt, %5, %6 : vector<2x2048xf32>
    %cst_6 = arith.constant 1.000000e-01 : f32
    %8 = vector.broadcast %cst_6 : f32 to vector<2x2048xf32>
    %9 = arith.mulf %8, %5 : vector<2x2048xf32>
    %10 = arith.select %7, %5, %9 : vector<2x2048xi1>, vector<2x2048xf32>
    %c0_7 = arith.constant 0 : index
    %c0_8 = arith.constant 0 : index
    %11 = vector.load %arg4[%c0_7, %c0_8] : memref<2x2048xf32, #tpu.memory_space<vmem>>, vector<2x2048xf32>
    tpu.vector_store %arg4[%c0_7, %c0_8], %10 {strides = array<i32>} : memref<2x2048xf32, #tpu.memory_space<vmem>>, vector<2x2048xf32>,
    return
  }
  func.func @transform_0(%arg0: i32) -> (i32, i32) {
    %c0_i32 = arith.constant 0 : i32
    %c0_i32_0 = arith.constant 0 : i32
    return %arg0, %c0_i32 : i32, i32
  }
  func.func @transform_1(%arg0: i32) -> (i32, i32) {
    %c0_i32 = arith.constant 0 : i32
    %c0_i32_0 = arith.constant 0 : i32
    %c0_i32_1 = arith.constant 0 : i32
    return %c0_i32, %c0_i32_0 : i32, i32
  }
  func.func @transform_2(%arg0: i32) -> (i32, i32) {
    %c0_i32 = arith.constant 0 : i32
    %c0_i32_0 = arith.constant 0 : i32
    %c0_i32_1 = arith.constant 0 : i32
    return %c0_i32, %c0_i32_0 : i32, i32
  }
  func.func @transform_3(%arg0: i32) -> (i32, i32) {
    %c0_i32 = arith.constant 0 : i32
    %c0_i32_0 = arith.constant 0 : i32
    return %arg0, %c0_i32 : i32, i32
  }
}

</mosaic_0001>

<bundles_post_ra>
// kernel: tpu_custom_call.1
= control target key start
LH: loop header
LB: loop body
LE: loop exit
PB: predicated region body
PF: predicated region fallthrough
CT: control target
= control target key end

     0   :  { %8 = vsyncpa [#allocation3], 0  ;;  %s1214_s0 = inlined_call_operand.hbm [shape: f32[2,64], index: 0, kind: input, shape index: {}]   ;;  %s1215_s1 = inlined_call_operand.hbm [shape: f32[64,2048], index: 1, kind: input, shape index: {}]   ;;  %s1216_s2 = inlined_call_operand.hbm [shape: f32[1,2048], index: 2, kind: input, shape index: {}]   ;;  %s1217_s3 = inlined_call_operand.hbm [shape: f32[2,2048], index: 3, kind: output, shape index: {}]  }
   0x1   :  { %9 = vsyncpa [#allocation6], 0 }
   0x2   :  { %10 = vsyncpa [#allocation4], 0  ;;  %s1095_s12 = smov [#allocation5]  }
   0x3   :  { %s26_s13 = sshll.u32 %s1095_s12, 4  ;;  %s27_s13 = int_to_ptr.vmem [resolvable:$true] %s26_s13 }
   0x4   :  { %s1017_s14 = scalar_lea.vmem %s27_s13, 16384  ;;  %p1022_p1 = scmp.lt.s32.totalorder %s27_s13, %s27_s13 }
   0x5   :  { %p1018_p0 = scmp.ne.s32.totalorder %s27_s13, %s1017_s14  ;;  %p1023_p2 = scmp.lt.s32.totalorder %s1017_s14, %s1017_s14 }
   0x7   :  { %p1024_p3 = por %p1023_p2, %p1022_p1 }
   0x9   :  { %p1025_p4 = pnand %p1024_p3, %p1018_p0 }
   0xb   :  { %1028 = shalt.err (!%p1025_p4)
}
   0xc   :  { %s1096_s15 = smov 2048   ;;  %s1097_s16 = smov 128  }
   0xd   :  { %32 = dma.hbm_to_vmem [thread:$0]  %s1215_s1, 16384, %s27_s13, [#allocation6], %s1096_s15, %s1096_s15, %s1097_s16  }
   0xe   :  { %s1098_s19 = smov [#allocation2]   ;;  %s1099_s21 = smov [#allocation7]  }
   0xf   :  { %s17_s20 = sshll.u32 %s1098_s19, 4  ;;  %s39_s22 = sshll.u32 %s1099_s21, 4  ;;  %s18_s20 = int_to_ptr.vmem [resolvable:$true] %s17_s20  ;;  %s40_s22 = int_to_ptr.vmem [resolvable:$true] %s39_s22 }
  0x10   :  { %s1037_s23 = scalar_lea.vmem %s18_s20, 32  ;;  %p1042_p6 = scmp.lt.s32.totalorder %s18_s20, %s18_s20 }
  0x11   :  { %p1038_p5 = scmp.ne.s32.totalorder %s18_s20, %s1037_s23  ;;  %p1043_p7 = scmp.lt.s32.totalorder %s1037_s23, %s1037_s23 }
  0x13   :  { %p1044_p8 = por %p1043_p7, %p1042_p6 }
  0x15   :  { %p1045_p9 = pnand %p1044_p8, %p1038_p5 }
  0x17   :  { %1048 = shalt.err (!%p1045_p9)
}
  0x18   :  { %20 = dma.hbm_to_vmem [thread:$0]  %s1214_s0, 32, %s18_s20, [#allocation3]  }
  0x19   :  { %s1057_s26 = scalar_lea.vmem %s40_s22, 256  ;;  %p1062_p11 = scmp.lt.s32.totalorder %s40_s22, %s40_s22 }
  0x1a   :  { %p1058_p10 = scmp.ne.s32.totalorder %s40_s22, %s1057_s26  ;;  %p1063_p12 = scmp.lt.s32.totalorder %s1057_s26, %s1057_s26 }
  0x1c   :  { %p1064_p13 = por %p1063_p12, %p1062_p11 }
  0x1e   :  { %p1065_p0 = pnand %p1064_p13, %p1058_p10 }
  0x20   :  { %1068 = shalt.err (!%p1065_p0)
}
  0x21   :  { %42 = dma.hbm_to_vmem [thread:$0]  %s1216_s2, 256, %s40_s22, [#allocation6]  }
  0x22   :  { %1089 = dma.done.wait [#allocation3], 32  }
  0x23   :  { %1090 = vsyncadd [#allocation3], 4294967264 }
  0x24   :  { %1091 = dma.done.wait [#allocation6], 16640  }
  0x25   :  { %1092 = vsyncadd [#allocation6], 4294950656  ;;  %v1100_v0 = vmov 0.0   ;;  %v166_v1 = vld [vmem:[#allocation5 + $0x388] sm:$0xff]  ;;  %v168_v2 = vld [vmem:[#allocation5 + $0x398] sm:$0xff]  ;;  %vm265_vm0 = vcmask 523264  }
  0x26   :  { %333 = vmatprep.mubr.f32.mxu0 %v1100_v0  ;;  %404 = vmatprep.mubr.f32.mxu1 %v1100_v0  ;;  %v165_v3 = vld [vmem:[#allocation5 + $0x380] sm:$0xff]  ;;  %v167_v4 = vld [vmem:[#allocation5 + $0x390] sm:$0xff]  ;;  %v150_v5 = vld [vmem:[#allocation5 + $0x308] sm:$0xff]  ;;  %s1102_s0 = smov [#allocation8]  }
  0x27   :  { %285 = vmatprep.subr.mxu0 %v166_v1  ;;  %356 = vmatprep.subr.mxu1 %v168_v2  ;;  %v152_v6 = vld [vmem:[#allocation5 + $0x318] sm:$0xff]  ;;  %v149_v7 = vld [vmem:[#allocation5 + $0x300] sm:$0xff]  ;;  %v151_v8 = vld [vmem:[#allocation5 + $0x310] sm:$0xff]  ;;  %s983_s2 = sshll.u32 %s1102_s0, 4  ;;  %s984_s2 = int_to_ptr.vmem [resolvable:$true] %s983_s2 }
  0x28   :  { %286 = vmatpush1.msra.mxu0 %v165_v3  ;;  %357 = vmatpush1.msra.mxu1 %v167_v4  ;;  %v134_v9 = vld [vmem:[#allocation5 + $0x288] sm:$0xff]  ;;  %v136_v10 = vld [vmem:[#allocation5 + $0x298] sm:$0xff]  ;;  %v133_v11 = vld [vmem:[#allocation5 + $0x280] sm:$0xff]  ;;  %s1069_s28 = scalar_lea.vmem %s984_s2, 512  ;;  %p1074_p2 = scmp.lt.s32.totalorder %s984_s2, %s984_s2 }
  0x29   :  { %287 = vmatprep.subr.mxu0 %v150_v5  ;;  %358 = vmatprep.subr.mxu1 %v152_v6  ;;  %v135_v12 = vld [vmem:[#allocation5 + $0x290] sm:$0xff]  ;;  %v118_v13 = vld [vmem:[#allocation5 + $0x208] sm:$0xff]  ;;  %v120_v14 = vld [vmem:[#allocation5 + $0x218] sm:$0xff]  ;;  %p1070_p1 = scmp.ne.s32.totalorder %s984_s2, %s1069_s28  ;;  %p1075_p3 = scmp.lt.s32.totalorder %s1069_s28, %s1069_s28 }
  0x2a   :  { %288 = vmatpush1.msra.mxu0 %v149_v7  ;;  %359 = vmatpush1.msra.mxu1 %v151_v8  ;;  %v117_v15 = vld [vmem:[#allocation5 + $0x200] sm:$0xff]  ;;  %v119_v16 = vld [vmem:[#allocation5 + $0x210] sm:$0xff]  ;;  %v102_v17 = vld [vmem:[#allocation5 + $0x188] sm:$0xff] }
  0x2b   :  { %289 = vmatprep.subr.mxu0 %v134_v9  ;;  %360 = vmatprep.subr.mxu1 %v136_v10  ;;  %v104_v18 = vld [vmem:[#allocation5 + $0x198] sm:$0xff]  ;;  %v101_v19 = vld [vmem:[#allocation5 + $0x180] sm:$0xff]  ;;  %v103_v20 = vld [vmem:[#allocation5 + $0x190] sm:$0xff]  ;;  %p1076_p4 = por %p1075_p3, %p1074_p2 }
  0x2c   :  { %290 = vmatpush1.msra.mxu0 %v133_v11  ;;  %361 = vmatpush1.msra.mxu1 %v135_v12  ;;  %v86_v21 = vld [vmem:[#allocation5 + $0x108] sm:$0xff]  ;;  %v88_v22 = vld [vmem:[#allocation5 + $0x118] sm:$0xff]  ;;  %v85_v23 = vld [vmem:[#allocation5 + $0x100] sm:$0xff] }
  0x2d   :  { %291 = vmatprep.subr.mxu0 %v118_v13  ;;  %362 = vmatprep.subr.mxu1 %v120_v14  ;;  %v87_v24 = vld [vmem:[#allocation5 + $0x110] sm:$0xff]  ;;  %v70_v25 = vld [vmem:[#allocation5 + $0x88] sm:$0xff]  ;;  %v72_v26 = vld [vmem:[#allocation5 + $0x98] sm:$0xff]  ;;  %p1077_p5 = pnand %p1076_p4, %p1070_p1 }
  0x2e   :  { %292 = vmatpush1.msra.mxu0 %v117_v15  ;;  %363 = vmatpush1.msra.mxu1 %v119_v16  ;;  %v69_v27 = vld [vmem:[#allocation5 + $0x80] sm:$0xff]  ;;  %v71_v28 = vld [vmem:[#allocation5 + $0x90] sm:$0xff]  ;;  %v54_v29 = vld [vmem:[#allocation5 + $0x8] sm:$0xff] }
  0x2f   :  { %293 = vmatprep.subr.mxu0 %v102_v17  ;;  %364 = vmatprep.subr.mxu1 %v104_v18  ;;  %v56_v30 = vld [vmem:[#allocation5 + $0x18] sm:$0xff]  ;;  %v53_v31 = vld [vmem:[#allocation5] sm:$0xff]  ;;  %v55_v32 = vld [vmem:[#allocation5 + $0x10] sm:$0xff] }
  0x30   :  { %294 = vmatpush1.msra.mxu0 %v101_v19  ;;  %365 = vmatpush1.msra.mxu1 %v103_v20  ;;  %v1134_v33 = vld [vmem:[#allocation2] sm:$0x3]  ;;  %v170_v34 = vld [vmem:[#allocation5 + $0x3a8] sm:$0xff]  ;;  %v169_v36 = vld [vmem:[#allocation5 + $0x3a0] sm:$0xff] }
  0x31   :  { %295 = vmatprep.subr.mxu0 %v86_v21  ;;  %366 = vmatprep.subr.mxu1 %v88_v22  ;;  %v172_v35 = vld [vmem:[#allocation5 + $0x3b8] sm:$0xff]  ;;  %v171_v37 = vld [vmem:[#allocation5 + $0x3b0] sm:$0xff]  ;;  %v154_v38 = vld [vmem:[#allocation5 + $0x328] sm:$0xff] }
  0x32   :  { %296 = vmatpush1.msra.mxu0 %v85_v23  ;;  %367 = vmatpush1.msra.mxu1 %v87_v24  ;;  %v156_v39 = vld [vmem:[#allocation5 + $0x338] sm:$0xff]  ;;  %v153_v40 = vld [vmem:[#allocation5 + $0x320] sm:$0xff]  ;;  %v155_v41 = vld [vmem:[#allocation5 + $0x330] sm:$0xff] }
  0x33   :  { %297 = vmatprep.subr.mxu0 %v70_v25  ;;  %368 = vmatprep.subr.mxu1 %v72_v26  ;;  %v138_v42 = vld [vmem:[#allocation5 + $0x2a8] sm:$0xff]  ;;  %v140_v43 = vld [vmem:[#allocation5 + $0x2b8] sm:$0xff]  ;;  %v137_v44 = vld [vmem:[#allocation5 + $0x2a0] sm:$0xff] }
  0x34   :  { %298 = vmatpush1.msra.mxu0 %v69_v27  ;;  %369 = vmatpush1.msra.mxu1 %v71_v28  ;;  %v139_v45 = vld [vmem:[#allocation5 + $0x2b0] sm:$0xff]  ;;  %v122_v46 = vld [vmem:[#allocation5 + $0x228] sm:$0xff]  ;;  %v124_v47 = vld [vmem:[#allocation5 + $0x238] sm:$0xff] }
  0x35   :  { %299 = vmatprep.subr.mxu0 %v54_v29  ;;  %370 = vmatprep.subr.mxu1 %v56_v30  ;;  %v121_v48 = vld [vmem:[#allocation5 + $0x220] sm:$0xff]  ;;  %v123_v49 = vld [vmem:[#allocation5 + $0x230] sm:$0xff]  ;;  %v106_v50 = vld [vmem:[#allocation5 + $0x1a8] sm:$0xff] }
  0x36   :  { %300 = vmatpush1.msra.mxu0 %v53_v31  ;;  %371 = vmatpush1.msra.mxu1 %v55_v32  ;;  %v108_v51 = vld [vmem:[#allocation5 + $0x1b8] sm:$0xff]  ;;  %v105_v52 = vld [vmem:[#allocation5 + $0x1a0] sm:$0xff]  ;;  %v107_v53 = vld [vmem:[#allocation5 + $0x1b0] sm:$0xff] }
  0x37   :  { %993 = vmatmul.mubr.msk.f32.vlgmr.msra.gmra.mxu0 %vm265_vm0, %v1134_v33  ;;  %994 = vmatmul.mubr.msk.f32.vlgmr.msra.gmra.mxu1 %vm265_vm0, %v1134_v33  ;;  %v90_v54 = vld [vmem:[#allocation5 + $0x128] sm:$0xff]  ;;  %v92_v55 = vld [vmem:[#allocation5 + $0x138] sm:$0xff]  ;;  %v89_v56 = vld [vmem:[#allocation5 + $0x120] sm:$0xff] }
  0x38   :  { %427 = vmatprep.subr.mxu0 %v170_v34  ;;  %498 = vmatprep.subr.mxu1 %v172_v35  ;;  %v91_v57 = vld [vmem:[#allocation5 + $0x130] sm:$0xff]  ;;  %v74_v58 = vld [vmem:[#allocation5 + $0xa8] sm:$0xff]  ;;  %v76_v59 = vld [vmem:[#allocation5 + $0xb8] sm:$0xff] }
  0x39   :  { %428 = vmatpush1.msra.mxu0 %v169_v36  ;;  %499 = vmatpush1.msra.mxu1 %v171_v37  ;;  %v73_v60 = vld [vmem:[#allocation5 + $0xa0] sm:$0xff]  ;;  %v75_v61 = vld [vmem:[#allocation5 + $0xb0] sm:$0xff]  ;;  %v58_v62 = vld [vmem:[#allocation5 + $0x28] sm:$0xff] }
  0x3a   :  { %429 = vmatprep.subr.mxu0 %v154_v38  ;;  %500 = vmatprep.subr.mxu1 %v156_v39  ;;  %v60_v63 = vld [vmem:[#allocation5 + $0x38] sm:$0xff]  ;;  %v57_v1 = vld [vmem:[#allocation5 + $0x20] sm:$0xff]  ;;  %v59_v2 = vld [vmem:[#allocation5 + $0x30] sm:$0xff] }
  0x3b   :  { %430 = vmatpush1.msra.mxu0 %v153_v40  ;;  %501 = vmatpush1.msra.mxu1 %v155_v41  ;;  %v174_v3 = vld [vmem:[#allocation5 + $0x3c8] sm:$0xff]  ;;  %v176_v4 = vld [vmem:[#allocation5 + $0x3d8] sm:$0xff]  ;;  %v173_v5 = vld [vmem:[#allocation5 + $0x3c0] sm:$0xff] }
  0x3c   :  { %431 = vmatprep.subr.mxu0 %v138_v42  ;;  %502 = vmatprep.subr.mxu1 %v140_v43  ;;  %v175_v6 = vld [vmem:[#allocation5 + $0x3d0] sm:$0xff]  ;;  %v158_v7 = vld [vmem:[#allocation5 + $0x348] sm:$0xff]  ;;  %v160_v8 = vld [vmem:[#allocation5 + $0x358] sm:$0xff] }
  0x3d   :  { %432 = vmatpush1.msra.mxu0 %v137_v44  ;;  %503 = vmatpush1.msra.mxu1 %v139_v45  ;;  %v157_v9 = vld [vmem:[#allocation5 + $0x340] sm:$0xff]  ;;  %v159_v10 = vld [vmem:[#allocation5 + $0x350] sm:$0xff]  ;;  %v142_v11 = vld [vmem:[#allocation5 + $0x2c8] sm:$0xff] }
  0x3e   :  { %433 = vmatprep.subr.mxu0 %v122_v46  ;;  %504 = vmatprep.subr.mxu1 %v124_v47  ;;  %v144_v12 = vld [vmem:[#allocation5 + $0x2d8] sm:$0xff]  ;;  %v141_v13 = vld [vmem:[#allocation5 + $0x2c0] sm:$0xff]  ;;  %v143_v14 = vld [vmem:[#allocation5 + $0x2d0] sm:$0xff] }
  0x3f   :  { %434 = vmatpush1.msra.mxu0 %v121_v48  ;;  %505 = vmatpush1.msra.mxu1 %v123_v49  ;;  %v126_v15 = vld [vmem:[#allocation5 + $0x248] sm:$0xff]  ;;  %v128_v16 = vld [vmem:[#allocation5 + $0x258] sm:$0xff]  ;;  %v125_v17 = vld [vmem:[#allocation5 + $0x240] sm:$0xff] }
  0x40   :  { %435 = vmatprep.subr.mxu0 %v106_v50  ;;  %506 = vmatprep.subr.mxu1 %v108_v51  ;;  %v127_v18 = vld [vmem:[#allocation5 + $0x250] sm:$0xff]  ;;  %v110_v19 = vld [vmem:[#allocation5 + $0x1c8] sm:$0xff]  ;;  %v112_v20 = vld [vmem:[#allocation5 + $0x1d8] sm:$0xff] }
  0x41   :  { %436 = vmatpush1.msra.mxu0 %v105_v52  ;;  %507 = vmatpush1.msra.mxu1 %v107_v53  ;;  %v109_v21 = vld [vmem:[#allocation5 + $0x1c0] sm:$0xff]  ;;  %v111_v22 = vld [vmem:[#allocation5 + $0x1d0] sm:$0xff]  ;;  %v94_v23 = vld [vmem:[#allocation5 + $0x148] sm:$0xff] }
  0x42   :  { %437 = vmatprep.subr.mxu0 %v90_v54  ;;  %508 = vmatprep.subr.mxu1 %v92_v55  ;;  %v96_v24 = vld [vmem:[#allocation5 + $0x158] sm:$0xff]  ;;  %v93_v25 = vld [vmem:[#allocation5 + $0x140] sm:$0xff]  ;;  %v95_v26 = vld [vmem:[#allocation5 + $0x150] sm:$0xff] }
  0x43   :  { %438 = vmatpush1.msra.mxu0 %v89_v56  ;;  %509 = vmatpush1.msra.mxu1 %v91_v57  ;;  %v78_v27 = vld [vmem:[#allocation5 + $0xc8] sm:$0xff]  ;;  %v80_v28 = vld [vmem:[#allocation5 + $0xd8] sm:$0xff]  ;;  %v77_v29 = vld [vmem:[#allocation5 + $0xc0] sm:$0xff] }
  0x44   :  { %439 = vmatprep.subr.mxu0 %v74_v58  ;;  %510 = vmatprep.subr.mxu1 %v76_v59  ;;  %v79_v30 = vld [vmem:[#allocation5 + $0xd0] sm:$0xff]  ;;  %v62_v31 = vld [vmem:[#allocation5 + $0x48] sm:$0xff]  ;;  %v64_v32 = vld [vmem:[#allocation5 + $0x58] sm:$0xff] }
  0x45   :  { %440 = vmatpush1.msra.mxu0 %v73_v60  ;;  %511 = vmatpush1.msra.mxu1 %v75_v61  ;;  %v61_v34 = vld [vmem:[#allocation5 + $0x40] sm:$0xff]  ;;  %v63_v35 = vld [vmem:[#allocation5 + $0x50] sm:$0xff]  ;;  %v178_v36 = vld [vmem:[#allocation5 + $0x3e8] sm:$0xff] }
  0x46   :  { %441 = vmatprep.subr.mxu0 %v58_v62  ;;  %512 = vmatprep.subr.mxu1 %v60_v63  ;;  %v180_v37 = vld [vmem:[#allocation5 + $0x3f8] sm:$0xff]  ;;  %v177_v38 = vld [vmem:[#allocation5 + $0x3e0] sm:$0xff]  ;;  %v179_v39 = vld [vmem:[#allocation5 + $0x3f0] sm:$0xff] }
  0x47   :  { %442 = vmatpush1.msra.mxu0 %v57_v1  ;;  %475 = vmatprep.mubr.f32.mxu0 %v1100_v0  ;;  %v162_v40 = vld [vmem:[#allocation5 + $0x368] sm:$0xff]  ;;  %v164_v41 = vld [vmem:[#allocation5 + $0x378] sm:$0xff]  ;;  %v161_v42 = vld [vmem:[#allocation5 + $0x360] sm:$0xff] }
  0x48   :  { %513 = vmatpush1.msra.mxu1 %v59_v2  ;;  %546 = vmatprep.mubr.f32.mxu1 %v1100_v0  ;;  %v163_v43 = vld [vmem:[#allocation5 + $0x370] sm:$0xff]  ;;  %v146_v44 = vld [vmem:[#allocation5 + $0x2e8] sm:$0xff]  ;;  %v148_v45 = vld [vmem:[#allocation5 + $0x2f8] sm:$0xff] }
  0x49   :  { %995 = vmatmul.mubr.msk.f32.vlgmr.msra.gmra.mxu0 %vm265_vm0, %v1134_v33  ;;  %996 = vmatmul.mubr.msk.f32.vlgmr.msra.gmra.mxu1 %vm265_vm0, %v1134_v33  ;;  %v145_v46 = vld [vmem:[#allocation5 + $0x2e0] sm:$0xff]  ;;  %v147_v47 = vld [vmem:[#allocation5 + $0x2f0] sm:$0xff]  ;;  %v130_v48 = vld [vmem:[#allocation5 + $0x268] sm:$0xff] }
  0x4a   :  { %569 = vmatprep.subr.mxu0 %v174_v3  ;;  %640 = vmatprep.subr.mxu1 %v176_v4  ;;  %v132_v49 = vld [vmem:[#allocation5 + $0x278] sm:$0xff]  ;;  %v129_v50 = vld [vmem:[#allocation5 + $0x260] sm:$0xff]  ;;  %v131_v51 = vld [vmem:[#allocation5 + $0x270] sm:$0xff] }
  0x4b   :  { %570 = vmatpush1.msra.mxu0 %v173_v5  ;;  %641 = vmatpush1.msra.mxu1 %v175_v6  ;;  %v114_v52 = vld [vmem:[#allocation5 + $0x1e8] sm:$0xff]  ;;  %v116_v53 = vld [vmem:[#allocation5 + $0x1f8] sm:$0xff]  ;;  %v113_v54 = vld [vmem:[#allocation5 + $0x1e0] sm:$0xff]  ;;  %v185_v5 = vlaneseq }
  0x4c   :  { %571 = vmatprep.subr.mxu0 %v158_v7  ;;  %642 = vmatprep.subr.mxu1 %v160_v8  ;;  %v115_v55 = vld [vmem:[#allocation5 + $0x1f0] sm:$0xff]  ;;  %v98_v56 = vld [vmem:[#allocation5 + $0x168] sm:$0xff]  ;;  %v100_v57 = vld [vmem:[#allocation5 + $0x178] sm:$0xff] }
  0x4d   :  { %572 = vmatpush1.msra.mxu0 %v157_v9  ;;  %643 = vmatpush1.msra.mxu1 %v159_v10  ;;  %v97_v58 = vld [vmem:[#allocation5 + $0x160] sm:$0xff]  ;;  %v99_v59 = vld [vmem:[#allocation5 + $0x170] sm:$0xff]  ;;  %v82_v60 = vld [vmem:[#allocation5 + $0xe8] sm:$0xff]  ;;  %v1158_v6 = vshrl.u32 %v185_v5, 7 }
  0x4e   :  { %573 = vmatprep.subr.mxu0 %v142_v11  ;;  %644 = vmatprep.subr.mxu1 %v144_v12  ;;  %v84_v61 = vld [vmem:[#allocation5 + $0xf8] sm:$0xff]  ;;  %v81_v62 = vld [vmem:[#allocation5 + $0xe0] sm:$0xff]  ;;  %v83_v63 = vld [vmem:[#allocation5 + $0xf0] sm:$0xff] }
  0x4f   :  { %574 = vmatpush1.msra.mxu0 %v141_v13  ;;  %645 = vmatpush1.msra.mxu1 %v143_v14  ;;  %v66_v1 = vld [vmem:[#allocation5 + $0x68] sm:$0xff]  ;;  %v68_v2 = vld [vmem:[#allocation5 + $0x78] sm:$0xff]  ;;  %v65_v3 = vld [vmem:[#allocation5 + $0x60] sm:$0xff]  ;;  %v187_v7 = vsub.s32 0, %v1158_v6  ;;  %v195_v8 = vsub.s32 2, %v1158_v6  ;;  %v191_v10 = vsub.s32 1, %v1158_v6 }
  0x50   :  { %575 = vmatprep.subr.mxu0 %v126_v15  ;;  %646 = vmatprep.subr.mxu1 %v128_v16  ;;  %v67_v4 = vld [vmem:[#allocation5 + $0x70] sm:$0xff]  ;;  %v181_v9 = vld [vmem:[#allocation7] sm:$0xff]  ;;  %v199_v11 = vsub.s32 3, %v1158_v6  ;;  %v1101_v13 = vmov 1983009808   ;;  %v182_v5 = vld [vmem:[#allocation7 + $0x8] sm:$0xff] }
  0x51   :  { %576 = vmatpush1.msra.mxu0 %v125_v17  ;;  %647 = vmatpush1.msra.mxu1 %v127_v18  ;;  %v196_v12 = vrot.slane %v181_v9, %v195_v8  ;;  %v192_v16 = vrot.slane %v181_v9, %v191_v10 }
  0x52   :  { %577 = vmatprep.subr.mxu0 %v110_v19  ;;  %648 = vmatprep.subr.mxu1 %v112_v20  ;;  %v200_v17 = vrot.slane %v181_v9, %v199_v11 }
  0x53   :  { %578 = vmatpush1.msra.mxu0 %v109_v21  ;;  %649 = vmatpush1.msra.mxu1 %v111_v22 }
  0x54   :  { %579 = vmatprep.subr.mxu0 %v94_v23  ;;  %650 = vmatprep.subr.mxu1 %v96_v24 }
  0x55   :  { %580 = vmatpush1.msra.mxu0 %v93_v25  ;;  %651 = vmatpush1.msra.mxu1 %v95_v26 }
  0x56   :  { %581 = vmatprep.subr.mxu0 %v78_v27  ;;  %652 = vmatprep.subr.mxu1 %v80_v28 }
  0x57   :  { %582 = vmatpush1.msra.mxu0 %v77_v29  ;;  %653 = vmatpush1.msra.mxu1 %v79_v30 }
  0x58   :  { %583 = vmatprep.subr.mxu0 %v62_v31  ;;  %654 = vmatprep.subr.mxu1 %v64_v32 }
  0x59   :  { %584 = vmatpush1.msra.mxu0 %v61_v34  ;;  %617 = vmatprep.mubr.f32.mxu0 %v1100_v0 }
  0x5a   :  { %655 = vmatpush1.msra.mxu1 %v63_v35  ;;  %688 = vmatprep.mubr.f32.mxu1 %v1100_v0 }
  0x5b   :  { %997 = vmatmul.mubr.msk.f32.vlgmr.msra.gmra.mxu0 %vm265_vm0, %v1134_v33  ;;  %998 = vmatmul.mubr.msk.f32.vlgmr.msra.gmra.mxu1 %vm265_vm0, %v1134_v33 }
  0x5c   :  { %711 = vmatprep.subr.mxu0 %v178_v36  ;;  %782 = vmatprep.subr.mxu1 %v180_v37 }
  0x5d   :  { %712 = vmatpush1.msra.mxu0 %v177_v38  ;;  %783 = vmatpush1.msra.mxu1 %v179_v39  ;;  %v203_v39 = vsub.s32 4, %v1158_v6 }
  0x5e   :  { %713 = vmatprep.subr.mxu0 %v162_v40  ;;  %784 = vmatprep.subr.mxu1 %v164_v41  ;;  %v211_v40 = vsub.s32 6, %v1158_v6 }
  0x5f   :  { %714 = vmatpush1.msra.mxu0 %v161_v42  ;;  %785 = vmatpush1.msra.mxu1 %v163_v43  ;;  %v207_v42 = vsub.s32 5, %v1158_v6  ;;  %v215_v43 = vsub.s32 7, %v1158_v6 }
  0x60   :  { %715 = vmatprep.subr.mxu0 %v146_v44  ;;  %786 = vmatprep.subr.mxu1 %v148_v45  ;;  %v204_v44 = vrot.slane %v181_v9, %v203_v39  ;;  %v212_v45 = vrot.slane %v181_v9, %v211_v40 }
  0x61   :  { %716 = vmatpush1.msra.mxu0 %v145_v46  ;;  %787 = vmatpush1.msra.mxu1 %v147_v47 }
  0x62   :  { %717 = vmatprep.subr.mxu0 %v130_v48  ;;  %788 = vmatprep.subr.mxu1 %v132_v49  ;;  %v208_v48 = vrot.slane %v181_v9, %v207_v42  ;;  %v216_v49 = vrot.slane %v181_v9, %v215_v43 }
  0x63   :  { %718 = vmatpush1.msra.mxu0 %v129_v50  ;;  %789 = vmatpush1.msra.mxu1 %v131_v51 }
  0x64   :  { %719 = vmatprep.subr.mxu0 %v114_v52  ;;  %790 = vmatprep.subr.mxu1 %v116_v53 }
  0x65   :  { %720 = vmatpush1.msra.mxu0 %v113_v54  ;;  %791 = vmatpush1.msra.mxu1 %v115_v55 }
  0x66   :  { %721 = vmatprep.subr.mxu0 %v98_v56  ;;  %792 = vmatprep.subr.mxu1 %v100_v57 }
  0x67   :  { %722 = vmatpush1.msra.mxu0 %v97_v58  ;;  %793 = vmatpush1.msra.mxu1 %v99_v59 }
  0x68   :  { %723 = vmatprep.subr.mxu0 %v82_v60  ;;  %794 = vmatprep.subr.mxu1 %v84_v61 }
  0x69   :  { %724 = vmatpush1.msra.mxu0 %v81_v62  ;;  %795 = vmatpush1.msra.mxu1 %v83_v63 }
  0x6a   :  { %725 = vmatprep.subr.mxu0 %v66_v1  ;;  %796 = vmatprep.subr.mxu1 %v68_v2 }
  0x6b   :  { %726 = vmatpush1.msra.mxu0 %v65_v3  ;;  %759 = vmatprep.mubr.f32.mxu0 %v1100_v0 }
  0x6c   :  { %797 = vmatpush1.msra.mxu1 %v67_v4  ;;  %830 = vmatprep.mubr.f32.mxu1 %v1100_v0  ;;  %v188_v0 = vrot.slane %v181_v9, %v187_v7 }
  0x6d   :  { %999 = vmatmul.mubr.msk.f32.vlgmr.msra.gmra.mxu0 %vm265_vm0, %v1134_v33  ;;  %1000 = vmatmul.mubr.msk.f32.vlgmr.msra.gmra.mxu1 %vm265_vm0, %v1134_v33  ;;  %v904_v33 = vunpack.c.l.s4 %v1101_v13 }
  0x6f   :  { %v905_v22 = vunpack.c.0.s8 %v904_v33 }
  0x71   :  { %v1173_v29 = vsub.s32 %v905_v22, %v1158_v6 }
  0xf7   :  { %v335_v14 = vpop.f32.mrf.mxu0  ;;  %v406_v15 = vpop.f32.mrf.mxu1 }
  0xf8   :  { %v336_v18 = vadd.f32 %v335_v14, %v188_v0  ;;  %v407_v19 = vadd.f32 %v406_v15, %v196_v12  ;;  %v220_v0 = vrot.slane %v182_v5, %v187_v7  ;;  %v228_v12 = vrot.slane %v182_v5, %v195_v8 }
  0xf9   :  { %v337_v20 = vpop.f32.mrf.mxu0  ;;  %v408_v21 = vpop.f32.mrf.mxu1  ;;  %v224_v14 = vrot.slane %v182_v5, %v191_v10  ;;  %v232_v15 = vrot.slane %v182_v5, %v199_v11 }
  0xfa   :  { %v853_v23 = vmul.f32 0.1, %v336_v18  ;;  %v855_v24 = vmul.f32 0.1, %v407_v19  ;;  %v338_v25 = vadd.f32 %v337_v20, %v192_v16  ;;  %v409_v26 = vadd.f32 %v408_v21, %v200_v17 }
  0xfb   :  { %vm837_vm1 = vcmp.gt.f32.partialorder %v336_v18, 0.0  ;;  %vm839_vm2 = vcmp.gt.f32.partialorder %v407_v19, 0.0 }
  0xfc   :  { %vm838_vm3 = vcmp.gt.f32.partialorder %v338_v25, 0.0  ;;  %v854_v27 = vmul.f32 0.1, %v338_v25  ;;  %vm840_vm4 = vcmp.gt.f32.partialorder %v409_v26, 0.0  ;;  %v856_v28 = vmul.f32 0.1, %v409_v26 }
  0xfd   :  { %v869_v30 = vsel %vm837_vm1, %v336_v18, %v853_v23  ;;  %v871_v31 = vsel %vm839_vm2, %v407_v19, %v855_v24 }
  0xfe   :  { %v870_v32 = vsel %vm838_vm3, %v338_v25, %v854_v27  ;;  %v872_v34 = vsel %vm840_vm4, %v409_v26, %v856_v28 }
  0xff   :  { %v901_v35 = vcombine.low %v869_v30, %v870_v32  ;;  %v902_v36 = vcombine.low %v871_v31, %v872_v34  ;;  %v236_v32 = vrot.slane %v182_v5, %v203_v39  ;;  %v244_v34 = vrot.slane %v182_v5, %v211_v40 }
 0x101   :  { %v909_v37 = vrot.slane %v901_v35, %v1173_v29  ;;  %v916_v38 = vrot.slane %v902_v36, %v1173_v29 }
 0x103   :  { %v917_v41 = vcombine.low %v909_v37, %v916_v38  ;;  %v240_v37 = vrot.slane %v182_v5, %v207_v42  ;;  %v248_v38 = vrot.slane %v182_v5, %v215_v43 }
 0x105   :  { %973 = vst [vmem:[#allocation8] sm:$0xff] %v917_v41 }
 0x109   :  { %v477_v46 = vpop.f32.mrf.mxu0  ;;  %v548_v47 = vpop.f32.mrf.mxu1 }
 0x10a   :  { %v478_v50 = vadd.f32 %v477_v46, %v204_v44  ;;  %v549_v51 = vadd.f32 %v548_v47, %v212_v45 }
 0x10b   :  { %v479_v52 = vpop.f32.mrf.mxu0  ;;  %v550_v53 = vpop.f32.mrf.mxu1 }
 0x10c   :  { %v857_v54 = vmul.f32 0.1, %v478_v50  ;;  %v859_v55 = vmul.f32 0.1, %v549_v51  ;;  %v480_v56 = vadd.f32 %v479_v52, %v208_v48  ;;  %v551_v57 = vadd.f32 %v550_v53, %v216_v49 }
 0x10d   :  { %vm841_vm5 = vcmp.gt.f32.partialorder %v478_v50, 0.0  ;;  %vm843_vm6 = vcmp.gt.f32.partialorder %v549_v51, 0.0 }
 0x10e   :  { %vm842_vm7 = vcmp.gt.f32.partialorder %v480_v56, 0.0  ;;  %v858_v58 = vmul.f32 0.1, %v480_v56  ;;  %vm844_vm8 = vcmp.gt.f32.partialorder %v551_v57, 0.0  ;;  %v860_v59 = vmul.f32 0.1, %v551_v57 }
 0x10f   :  { %v873_v60 = vsel %vm841_vm5, %v478_v50, %v857_v54  ;;  %v875_v61 = vsel %vm843_vm6, %v549_v51, %v859_v55 }
 0x110   :  { %v874_v62 = vsel %vm842_vm7, %v480_v56, %v858_v58  ;;  %v876_v63 = vsel %vm844_vm8, %v551_v57, %v860_v59 }
 0x111   :  { %v918_v1 = vcombine.low %v873_v60, %v874_v62  ;;  %v919_v2 = vcombine.low %v875_v61, %v876_v63 }
 0x113   :  { %v926_v3 = vrot.slane %v918_v1, %v1173_v29  ;;  %v933_v4 = vrot.slane %v919_v2, %v1173_v29 }
 0x115   :  { %v934_v9 = vcombine.low %v926_v3, %v933_v4 }
 0x117   :  { %974 = vst [vmem:[#allocation8 + $0x8] sm:$0xff] %v934_v9 }
 0x11b   :  { %v619_v13 = vpop.f32.mrf.mxu0  ;;  %v690_v33 = vpop.f32.mrf.mxu1 }
 0x11c   :  { %v620_v16 = vadd.f32 %v619_v13, %v220_v0  ;;  %v691_v17 = vadd.f32 %v690_v33, %v228_v12 }
 0x11d   :  { %v621_v18 = vpop.f32.mrf.mxu0  ;;  %v692_v19 = vpop.f32.mrf.mxu1 }
 0x11e   :  { %v861_v20 = vmul.f32 0.1, %v620_v16  ;;  %v863_v21 = vmul.f32 0.1, %v691_v17  ;;  %v622_v22 = vadd.f32 %v621_v18, %v224_v14  ;;  %v693_v23 = vadd.f32 %v692_v19, %v232_v15 }
 0x11f   :  { %vm845_vm9 = vcmp.gt.f32.partialorder %v620_v16, 0.0  ;;  %vm847_vm10 = vcmp.gt.f32.partialorder %v691_v17, 0.0 }
 0x120   :  { %vm846_vm11 = vcmp.gt.f32.partialorder %v622_v22, 0.0  ;;  %v862_v7 = vmul.f32 0.1, %v622_v22  ;;  %vm848_vm12 = vcmp.gt.f32.partialorder %v693_v23, 0.0  ;;  %v864_v8 = vmul.f32 0.1, %v693_v23 }
 0x121   :  { %v877_v24 = vsel %vm845_vm9, %v620_v16, %v861_v20  ;;  %v879_v25 = vsel %vm847_vm10, %v691_v17, %v863_v21 }
 0x122   :  { %v878_v10 = vsel %vm846_vm11, %v622_v22, %v862_v7  ;;  %v880_v26 = vsel %vm848_vm12, %v693_v23, %v864_v8 }
 0x123   :  { %v935_v27 = vcombine.low %v877_v24, %v878_v10  ;;  %v936_v11 = vcombine.low %v879_v25, %v880_v26 }
 0x125   :  { %v943_v28 = vrot.slane %v935_v27, %v1173_v29  ;;  %v950_v30 = vrot.slane %v936_v11, %v1173_v29 }
 0x127   :  { %v951_v31 = vcombine.low %v943_v28, %v950_v30 }
 0x129   :  { %975 = vst [vmem:[#allocation8 + $0x10] sm:$0xff] %v951_v31 }
 0x12d   :  { %v761_v35 = vpop.f32.mrf.mxu0  ;;  %v832_v36 = vpop.f32.mrf.mxu1 }
 0x12e   :  { %v762_v41 = vadd.f32 %v761_v35, %v236_v32  ;;  %v833_v44 = vadd.f32 %v832_v36, %v244_v34 }
 0x12f   :  { %v763_v45 = vpop.f32.mrf.mxu0  ;;  %v834_v46 = vpop.f32.mrf.mxu1 }
 0x130   :  { %v865_v47 = vmul.f32 0.1, %v762_v41  ;;  %v867_v48 = vmul.f32 0.1, %v833_v44  ;;  %v764_v49 = vadd.f32 %v763_v45, %v240_v37  ;;  %v835_v50 = vadd.f32 %v834_v46, %v248_v38 }
 0x131   :  { %vm849_vm13 = vcmp.gt.f32.partialorder %v762_v41, 0.0  ;;  %vm851_vm14 = vcmp.gt.f32.partialorder %v833_v44, 0.0 }
 0x132   :  { %vm850_vm15 = vcmp.gt.f32.partialorder %v764_v49, 0.0  ;;  %v866_v39 = vmul.f32 0.1, %v764_v49  ;;  %vm852_vm0 = vcmp.gt.f32.partialorder %v835_v50, 0.0  ;;  %v868_v40 = vmul.f32 0.1, %v835_v50 }
 0x133   :  { %v881_v51 = vsel %vm849_vm13, %v762_v41, %v865_v47  ;;  %v883_v52 = vsel %vm851_vm14, %v833_v44, %v867_v48 }
 0x134   :  { %v882_v42 = vsel %vm850_vm15, %v764_v49, %v866_v39  ;;  %v884_v53 = vsel %vm852_vm0, %v835_v50, %v868_v40 }
 0x135   :  { %v952_v6 = vcombine.low %v881_v51, %v882_v42  ;;  %v953_v43 = vcombine.low %v883_v52, %v884_v53 }
 0x137   :  { %v960_v54 = vrot.slane %v952_v6, %v1173_v29  ;;  %v967_v55 = vrot.slane %v953_v43, %v1173_v29 }
 0x139   :  { %v968_v56 = vcombine.low %v960_v54, %v967_v55 }
 0x13b   :  { %976 = vst [vmem:[#allocation8 + $0x18] sm:$0xff] %v968_v56 }
 0x13c   :  { %1080 = shalt.err (!%p1077_p5)
}
 0x13d   :  { %986 = dma.vmem_to_hbm [thread:$0]  %s984_s2, 512, %s1217_s3, [#allocation4]  }
 0x13e   :  { %1093 = dma.done.wait [#allocation4], 512  }
 0x13f   :  { %1094 = vsyncadd [#allocation4], 4294966784 }
 0x140   :  { %990 = vsyncpa [#allocation3], 1 }
 0x141   :  { %991 = vsyncpa [#allocation6], 1 }
 0x142   :  { %992 = vsyncpa [#allocation4], 1 }

</bundles_post_ra>
